<compile_context>
chip_gen: v6e
topology: v6e:2x2x1
jax: 0.10.0
libtpu: 0.0.40
codegen_flags: <defaults>
</compile_context>

<pallas_src>
import functools

import jax
import jax.numpy as jnp
from jax import lax
from jax.experimental import pallas as pl
from jax.experimental.pallas import tpu as pltpu


def _cdiv(a, b):
    return -(-a // b)


def _round_up(a, b):
    return _cdiv(a, b) * b


@functools.partial(jax.jit,
                   static_argnames=("map_size", "n_tile", "compute_dtype"))
def semantic_map_generation(x, w_base, w_sem, *, map_size, n_tile=2048,
                            compute_dtype=jnp.bfloat16):
    """
    x:       (B, C, D, H, W) float32 (NCDHW, as in the PyTorch module)
    w_base:  (map_dim, C, 3, 3, 3)       Conv3d weight, no bias
    w_sem:   (map_code_num, C, 3, 3, 3)  Conv3d weight, no bias
    returns: (B, map_dim, ms0, ms1, ms2)
    """
    B, C, D, H, W = x.shape
    MD = w_base.shape[0]
    K = w_sem.shape[0]
    assert K == map_size[0] * map_size[1] * map_size[2]

    Dp, Hp, Wp = D + 2, H + 2, W + 2
    HpWp = Hp * Wp
    CK = C * 27
    CKPAD = _round_up(CK, 128)            # pad the contraction dim to 128

    # Largest tap offset relative to a base position (kd = kh = kw = 2).
    halo = 2 * HpWp + 2 * Wp + 2
    halo_pad = _round_up(halo, 128)
    # N tile (lane axis): a multiple of halo_pad so the halo block of the same
    # array lands exactly on a block boundary -> no overlapping BlockSpec needed.
    nt = halo_pad * max(1, n_tile // halo_pad)
    ratio = nt // halo_pad
    p_total = D * HpWp                    # enumerated base positions (masked)
    num_tiles = _cdiv(p_total, nt)
    np_pad = num_tiles * nt + halo_pad    # flat length incl. the tail halo

    # Channels-first, spatially zero-padded, flattened spatial axis (lane-major).
    xp = jnp.pad(x, ((0, 0), (0, 0), (1, 1), (1, 1), (1, 1)))
    xpf = xp.reshape(B, C, Dp * HpWp)
    xpf = jnp.pad(xpf, ((0, 0), (0, 0), (0, np_pad - Dp * HpWp)))
    xpf = xpf.astype(compute_dtype)

    # Validity of each base position p (is it an interior voxel of the padded
    # volume?).  Invalid positions get softmax weight 0 inside the kernel.
    p = jnp.arange(np_pad, dtype=jnp.int32)
    d_idx = p // HpWp
    r = p - d_idx * HpWp
    h_idx = r // Wp
    w_idx = r - h_idx * Wp
    valid = ((d_idx < D) & (h_idx < H) & (w_idx < W)).astype(jnp.float32)
    valid = valid.reshape(1, np_pad)

    # Fused projection weights, tap-major ((kd,kh,kw), c) columns, zero-padded.
    wb = jnp.transpose(w_base, (0, 2, 3, 4, 1)).reshape(MD, CK)
    ws = jnp.transpose(w_sem, (0, 2, 3, 4, 1)).reshape(K, CK)
    w_all = jnp.concatenate([wb, ws], axis=0)                 # (MD+K, CK)
    w_all = jnp.pad(w_all, ((0, 0), (0, CKPAD - CK))).astype(compute_dtype)

    NEG = -1e30  # large-negative logit for masked positions

    def kernel(xm_ref, xh_ref, mk_ref, w_ref, o_ref, m_sc, s_sc, acc_sc):
        t = pl.program_id(1)

        @pl.when(t == 0)
        def _init():
            m_sc[...] = jnp.full((K, 1), NEG, dtype=jnp.float32)
            s_sc[...] = jnp.zeros((K, 1), dtype=jnp.float32)
            acc_sc[...] = jnp.zeros((K, MD), dtype=jnp.float32)

        # (C, nt + halo_pad) slab covering this tile plus the conv halo.
        xc = jnp.concatenate([xm_ref[0], xh_ref[0]], axis=1)

        # In-VMEM im2col: 27 shifted lane slices -> (CKPAD, nt), tap-major rows.
        taps = []
        for kd in range(3):
            for kh in range(3):
                for kw in range(3):
                    off = kd * HpWp + kh * Wp + kw
                    taps.append(xc[:, off:off + nt])          # (C, nt)
        if CKPAD > CK:
            taps.append(jnp.zeros((CKPAD - CK, nt), dtype=xc.dtype))
        p_t = jnp.concatenate(taps, axis=0)                   # (CKPAD, nt)

        # Fused projection: one bf16 MXU dot, N on the lane axis (lane-dense).
        proj = jnp.dot(w_ref[...], p_t,
                       preferred_element_type=jnp.float32)    # (MD+K, nt) f32
        feat = proj[:MD, :]                                   # (MD, nt)
        logit = proj[MD:, :]                                  # (K, nt)

        # Mask non-interior / padded base positions -> softmax weight 0.
        msk = mk_ref[...]                                     # (1, nt)
        logit = jnp.where(msk > 0.5, logit, NEG)

        # Online softmax over the spatial axis (lane reductions, f32 state).
        t_max = jnp.max(logit, axis=1, keepdims=True)         # (K, 1)
        m_prev = m_sc[...]
        m_new = jnp.maximum(m_prev, t_max)
        alpha = jnp.exp(m_prev - m_new)                       # (K, 1)
        p_exp = jnp.exp(logit - m_new)                        # (K, nt)
        s_sc[...] = alpha * s_sc[...] + jnp.sum(p_exp, axis=1, keepdims=True)
        acc_sc[...] = alpha * acc_sc[...] + lax.dot_general(
            p_exp, feat, (((1,), (1,)), ((), ())),
            preferred_element_type=jnp.float32)               # (K, MD)
        m_sc[...] = m_new

        @pl.when(t == pl.num_programs(1) - 1)
        def _finalize():
            inv = pl.reciprocal(s_sc[...], approx=True)       # (K, 1)
            o_ref[0] = jnp.transpose(acc_sc[...] * inv).astype(o_ref.dtype)

    out = pl.pallas_call(
        kernel,
        out_shape=jax.ShapeDtypeStruct((B, MD, K), jnp.float32),
        grid_spec=pltpu.PrefetchScalarGridSpec(
            num_scalar_prefetch=0,
            grid=(B, num_tiles),
            in_specs=[
                # main tile of the flattened padded input
                pl.BlockSpec((1, C, nt), lambda b, t: (b, 0, t)),
                # aligned halo block just past the main tile (same array)
                pl.BlockSpec((1, C, halo_pad),
                             lambda b, t: (b, 0, (t + 1) * ratio)),
                # per-position validity mask
                pl.BlockSpec((1, nt), lambda b, t: (0, t)),
                # fused projection weights (resident across the grid)
                pl.BlockSpec((MD + K, CKPAD), lambda b, t: (0, 0)),
            ],
            out_specs=pl.BlockSpec((1, MD, K), lambda b, t: (b, 0, 0)),
            scratch_shapes=[
                pltpu.VMEM((K, 1), jnp.float32),    # running max
                pltpu.VMEM((K, 1), jnp.float32),    # running sum
                pltpu.VMEM((K, MD), jnp.float32),   # accumulator
            ],
        ),
        compiler_params=pltpu.CompilerParams(
            dimension_semantics=("parallel", "arbitrary"),
            # safe on v5e/v6e (128 MiB) and v7x (64 MiB); working set per tile
            # at nt=2048, C<=32 is only a few MiB.
            vmem_limit_bytes=32 * 1024 * 1024,
        ),
    )(xpf, xpf, valid, w_all)

    return out.reshape(B, MD, map_size[0], map_size[1], map_size[2])


# ---------------------------------------------------------------------------
# Pure-JAX reference (f32, HIGHEST precision), used only for the check below.
# ---------------------------------------------------------------------------
def _im2col_3d(x):
    B, C, D, H, W = x.shape
    xp = jnp.pad(x, ((0, 0), (0, 0), (1, 1), (1, 1), (1, 1)))
    taps = []
    for kd in range(3):
        for kh in range(3):
            for kw in range(3):
                taps.append(xp[:, :, kd:kd + D, kh:kh + H, kw:kw + W])
    patches = jnp.stack(taps, axis=2).reshape(B, C * 27, D * H * W)
    return jnp.transpose(patches, (0, 2, 1))


def _reference(x, w_base, w_sem, map_size):
    B, C, D, H, W = x.shape
    MD = w_base.shape[0]
    K = w_sem.shape[0]
    CK = C * 27
    patches = _im2col_3d(x)                                   # (B, N, CK)
    hp = jax.lax.Precision.HIGHEST
    feat = jnp.einsum('bnc,mc->bmn', patches, w_base.reshape(MD, CK),
                      precision=hp)
    logits = jnp.einsum('bnc,kc->bkn', patches, w_sem.reshape(K, CK),
                        precision=hp)
    wsoft = jax.nn.softmax(logits, axis=2)
    sem = jnp.einsum('bij,bkj->bik', feat, wsoft, precision=hp)
    return sem.reshape(B, MD, *map_size)


if __name__ == "__main__":
    B, C = 2, 4                      # batch, feat_dim
    D = H = W = 8                    # spatial
    map_dim = 8
    map_size = (2, 2, 2)             # map_code_num = 8
    map_code_num = map_size[0] * map_size[1] * map_size[2]

    key = jax.random.PRNGKey(0)
    kx, kb, ks = jax.random.split(key, 3)

    x = jax.random.normal(kx, (B, C, D, H, W), dtype=jnp.float32)
    scale = 1.0 / jnp.sqrt(jnp.float32(C * 27))
    w_base = jax.random.normal(kb, (map_dim, C, 3, 3, 3), jnp.float32) * scale
    w_sem = jax.random.normal(ks, (map_code_num, C, 3, 3, 3), jnp.float32) * scale

    # n_tile=512 -> 2 spatial tiles at this size, exercising the online softmax.
    out = semantic_map_generation(x, w_base, w_sem, map_size=map_size,
                                  n_tile=512)
    out = jax.block_until_ready(out)

    ref = _reference(x, w_base, w_sem, map_size)
    assert out.shape == (B, map_dim, *map_size), out.shape
    # bf16 inputs / f32 accumulation vs. an f32 HIGHEST-precision reference.
    assert jnp.allclose(out, ref, rtol=2e-2, atol=5e-3), \
        float(jnp.max(jnp.abs(out - ref)))

    print("KERNEL_OK")
</pallas_src>

<mosaic_0001>
module attributes {stable_mosaic.version = 11 : i64} {
  func.func @kernel(%arg0: i32, %arg1: i32, %arg2: memref<1x4x512xbf16, #tpu.memory_space<vmem>>, %arg3: memref<1x4x256xbf16, #tpu.memory_space<vmem>>, %arg4: memref<1x512xf32, #tpu.memory_space<vmem>>, %arg5: memref<16x128xbf16, #tpu.memory_space<vmem>>, %arg6: memref<1x8x8xf32, #tpu.memory_space<vmem>>, %arg7: memref<8x1xf32, #tpu.memory_space<vmem>>, %arg8: memref<8x1xf32, #tpu.memory_space<vmem>>, %arg9: memref<8x8xf32, #tpu.memory_space<vmem>>) attributes {dimension_semantics = [#tpu.dimension_semantics<parallel>, #tpu.dimension_semantics<arbitrary>], iteration_bounds = array<i64: 2, 2>, scalar_prefetch = 0 : i64, scratch_operands = 3 : i64, tpu.core_type = #tpu.core_type<tc>, window_params = [{transform_indices = @transform_0, window_bounds = array<i64: 1, 4, 512>}, {transform_indices = @transform_1, window_bounds = array<i64: 1, 4, 256>}, {transform_indices = @transform_2, window_bounds = array<i64: 1, 512>}, {pipeline_mode = #tpu.pipeline_mode<synchronous>, transform_indices = @transform_3, window_bounds = array<i64: 16, 128>}, {transform_indices = @transform_4, window_bounds = array<i64: 1, 8, 8>}]} {
    %c0_i32 = arith.constant 0 : i32
    %0 = arith.cmpi eq, %arg1, %c0_i32 : i32
    %1 = arith.extui %0 : i1 to i32
    %c0_i32_0 = arith.constant 0 : i32
    %2 = arith.cmpi ne, %1, %c0_i32_0 : i32
    scf.if %2 {
      %cst_29 = arith.constant -1.000000e+30 : f32
      %75 = vector.broadcast %cst_29 : f32 to vector<8x1xf32>
      %c0_30 = arith.constant 0 : index
      %c0_31 = arith.constant 0 : index
      %76 = vector.load %arg7[%c0_30, %c0_31] : memref<8x1xf32, #tpu.memory_space<vmem>>, vector<8x1xf32>
      tpu.vector_store %arg7[%c0_30, %c0_31], %75 {strides = array<i32>} : memref<8x1xf32, #tpu.memory_space<vmem>>, vector<8x1xf32>,
      %cst_32 = arith.constant 0.000000e+00 : f32
      %77 = vector.broadcast %cst_32 : f32 to vector<8x1xf32>
      %c0_33 = arith.constant 0 : index
      %c0_34 = arith.constant 0 : index
      %78 = vector.load %arg8[%c0_33, %c0_34] : memref<8x1xf32, #tpu.memory_space<vmem>>, vector<8x1xf32>
      tpu.vector_store %arg8[%c0_33, %c0_34], %77 {strides = array<i32>} : memref<8x1xf32, #tpu.memory_space<vmem>>, vector<8x1xf32>,
      %cst_35 = arith.constant 0.000000e+00 : f32
      %79 = vector.broadcast %cst_35 : f32 to vector<8x8xf32>
      %c0_36 = arith.constant 0 : index
      %c0_37 = arith.constant 0 : index
      %80 = vector.load %arg9[%c0_36, %c0_37] : memref<8x8xf32, #tpu.memory_space<vmem>>, vector<8x8xf32>
      tpu.vector_store %arg9[%c0_36, %c0_37], %79 {strides = array<i32>} : memref<8x8xf32, #tpu.memory_space<vmem>>, vector<8x8xf32>,
    } else {
    }
    %c0 = arith.constant 0 : index
    %c0_1 = arith.constant 0 : index
    %c0_2 = arith.constant 0 : index
    %3 = vector.load %arg2[%c0, %c0_1, %c0_2] : memref<1x4x512xbf16, #tpu.memory_space<vmem>>, vector<1x4x512xbf16>
    %4 = vector.shape_cast %3 : vector<1x4x512xbf16> to vector<4x512xbf16>
    %c0_3 = arith.constant 0 : index
    %c0_4 = arith.constant 0 : index
    %c0_5 = arith.constant 0 : index
    %5 = vector.load %arg3[%c0_3, %c0_4, %c0_5] : memref<1x4x256xbf16, #tpu.memory_space<vmem>>, vector<1x4x256xbf16>
    %6 = vector.shape_cast %5 : vector<1x4x256xbf16> to vector<4x256xbf16>
    %7 = tpu.concatenate %4, %6 in 1 : vector<4x512xbf16>, vector<4x256xbf16> -> vector<4x768xbf16>
    %8 = vector.extract_strided_slice %7 {offsets = [0, 0], sizes = [4, 512], strides = [1, 1]} : vector<4x768xbf16> to vector<4x512xbf16>
    %9 = vector.extract_strided_slice %7 {offsets = [0, 1], sizes = [4, 512], strides = [1, 1]} : vector<4x768xbf16> to vector<4x512xbf16>
    %10 = vector.extract_strided_slice %7 {offsets = [0, 2], sizes = [4, 512], strides = [1, 1]} : vector<4x768xbf16> to vector<4x512xbf16>
    %11 = vector.extract_strided_slice %7 {offsets = [0, 10], sizes = [4, 512], strides = [1, 1]} : vector<4x768xbf16> to vector<4x512xbf16>
    %12 = vector.extract_strided_slice %7 {offsets = [0, 11], sizes = [4, 512], strides = [1, 1]} : vector<4x768xbf16> to vector<4x512xbf16>
    %13 = vector.extract_strided_slice %7 {offsets = [0, 12], sizes = [4, 512], strides = [1, 1]} : vector<4x768xbf16> to vector<4x512xbf16>
    %14 = vector.extract_strided_slice %7 {offsets = [0, 20], sizes = [4, 512], strides = [1, 1]} : vector<4x768xbf16> to vector<4x512xbf16>
    %15 = vector.extract_strided_slice %7 {offsets = [0, 21], sizes = [4, 512], strides = [1, 1]} : vector<4x768xbf16> to vector<4x512xbf16>
    %16 = vector.extract_strided_slice %7 {offsets = [0, 22], sizes = [4, 512], strides = [1, 1]} : vector<4x768xbf16> to vector<4x512xbf16>
    %17 = vector.extract_strided_slice %7 {offsets = [0, 100], sizes = [4, 512], strides = [1, 1]} : vector<4x768xbf16> to vector<4x512xbf16>
    %18 = vector.extract_strided_slice %7 {offsets = [0, 101], sizes = [4, 512], strides = [1, 1]} : vector<4x768xbf16> to vector<4x512xbf16>
    %19 = vector.extract_strided_slice %7 {offsets = [0, 102], sizes = [4, 512], strides = [1, 1]} : vector<4x768xbf16> to vector<4x512xbf16>
    %20 = vector.extract_strided_slice %7 {offsets = [0, 110], sizes = [4, 512], strides = [1, 1]} : vector<4x768xbf16> to vector<4x512xbf16>
    %21 = vector.extract_strided_slice %7 {offsets = [0, 111], sizes = [4, 512], strides = [1, 1]} : vector<4x768xbf16> to vector<4x512xbf16>
    %22 = vector.extract_strided_slice %7 {offsets = [0, 112], sizes = [4, 512], strides = [1, 1]} : vector<4x768xbf16> to vector<4x512xbf16>
    %23 = vector.extract_strided_slice %7 {offsets = [0, 120], sizes = [4, 512], strides = [1, 1]} : vector<4x768xbf16> to vector<4x512xbf16>
    %24 = vector.extract_strided_slice %7 {offsets = [0, 121], sizes = [4, 512], strides = [1, 1]} : vector<4x768xbf16> to vector<4x512xbf16>
    %25 = vector.extract_strided_slice %7 {offsets = [0, 122], sizes = [4, 512], strides = [1, 1]} : vector<4x768xbf16> to vector<4x512xbf16>
    %26 = vector.extract_strided_slice %7 {offsets = [0, 200], sizes = [4, 512], strides = [1, 1]} : vector<4x768xbf16> to vector<4x512xbf16>
    %27 = vector.extract_strided_slice %7 {offsets = [0, 201], sizes = [4, 512], strides = [1, 1]} : vector<4x768xbf16> to vector<4x512xbf16>
    %28 = vector.extract_strided_slice %7 {offsets = [0, 202], sizes = [4, 512], strides = [1, 1]} : vector<4x768xbf16> to vector<4x512xbf16>
    %29 = vector.extract_strided_slice %7 {offsets = [0, 210], sizes = [4, 512], strides = [1, 1]} : vector<4x768xbf16> to vector<4x512xbf16>
    %30 = vector.extract_strided_slice %7 {offsets = [0, 211], sizes = [4, 512], strides = [1, 1]} : vector<4x768xbf16> to vector<4x512xbf16>
    %31 = vector.extract_strided_slice %7 {offsets = [0, 212], sizes = [4, 512], strides = [1, 1]} : vector<4x768xbf16> to vector<4x512xbf16>
    %32 = vector.extract_strided_slice %7 {offsets = [0, 220], sizes = [4, 512], strides = [1, 1]} : vector<4x768xbf16> to vector<4x512xbf16>
    %33 = vector.extract_strided_slice %7 {offsets = [0, 221], sizes = [4, 512], strides = [1, 1]} : vector<4x768xbf16> to vector<4x512xbf16>
    %34 = vector.extract_strided_slice %7 {offsets = [0, 222], sizes = [4, 512], strides = [1, 1]} : vector<4x768xbf16> to vector<4x512xbf16>
    %cst = arith.constant 0.000000e+00 : bf16
    %35 = vector.broadcast %cst : bf16 to vector<20x512xbf16>
    %36 = tpu.concatenate %8, %9, %10, %11, %12, %13, %14, %15, %16, %17, %18, %19, %20, %21, %22, %23 in 0 : vector<4x512xbf16>, vector<4x512xbf16>, vector<4x512xbf16>, vector<4x512xbf16>, vector<4x512xbf16>, vector<4x512xbf16>, vector<4x512xbf16>, vector<4x512xbf16>, vector<4x512xbf16>, vector<4x512xbf16>, vector<4x512xbf16>, vector<4x512xbf16>, vector<4x512xbf16>, vector<4x512xbf16>, vector<4x512xbf16>, vector<4x512xbf16> -> vector<64x512xbf16>
    %37 = tpu.concatenate %24, %25, %26, %27, %28, %29, %30, %31, %32, %33, %34, %35 in 0 : vector<4x512xbf16>, vector<4x512xbf16>, vector<4x512xbf16>, vector<4x512xbf16>, vector<4x512xbf16>, vector<4x512xbf16>, vector<4x512xbf16>, vector<4x512xbf16>, vector<4x512xbf16>, vector<4x512xbf16>, vector<4x512xbf16>, vector<20x512xbf16> -> vector<64x512xbf16>
    %38 = tpu.concatenate %36, %37 in 0 : vector<64x512xbf16>, vector<64x512xbf16> -> vector<128x512xbf16>
    %c0_6 = arith.constant 0 : index
    %c0_7 = arith.constant 0 : index
    %39 = vector.load %arg5[%c0_6, %c0_7] : memref<16x128xbf16, #tpu.memory_space<vmem>>, vector<16x128xbf16>
    %cst_8 = arith.constant dense<0.000000e+00> : vector<16x512xf32>
    %40 = tpu.matmul %39, %38, %cst_8 {dimension_numbers = #tpu.dot_dimension_numbers<[1], [0], [0], [1], [0, 0, 1, 1], [], []>} : vector<16x128xbf16>, vector<128x512xbf16>, vector<16x512xf32> -> vector<16x512xf32>
    %41 = vector.extract_strided_slice %40 {offsets = [0, 0], sizes = [8, 512], strides = [1, 1]} : vector<16x512xf32> to vector<8x512xf32>
    %42 = vector.extract_strided_slice %40 {offsets = [8, 0], sizes = [8, 512], strides = [1, 1]} : vector<16x512xf32> to vector<8x512xf32>
    %c0_9 = arith.constant 0 : index
    %c0_10 = arith.constant 0 : index
    %43 = vector.load %arg4[%c0_9, %c0_10] : memref<1x512xf32, #tpu.memory_space<vmem>>, vector<1x512xf32>
    %cst_11 = arith.constant 5.000000e-01 : f32
    %44 = vector.broadcast %cst_11 : f32 to vector<1x512xf32>
    %45 = arith.cmpf ogt, %43, %44 : vector<1x512xf32>
    %cst_12 = arith.constant -1.000000e+30 : f32
    %46 = vector.shape_cast %45 : vector<1x512xi1> to vector<1x512xi1>
    %47 = vector.broadcast %46 : vector<1x512xi1> to vector<8x512xi1>
    %48 = vector.broadcast %cst_12 : f32 to vector<8x512xf32>
    %49 = arith.select %47, %42, %48 : vector<8x512xi1>, vector<8x512xf32>
    %cst_13 = arith.constant dense<0xFF800000> : vector<8xf32>
    %50 = vector.multi_reduction <maximumf>, %49, %cst_13 [1] : vector<8x512xf32> to vector<8xf32>
    %51 = vector.shape_cast %50 : vector<8xf32> to vector<8x1xf32>
    %c0_14 = arith.constant 0 : index
    %c0_15 = arith.constant 0 : index
    %52 = vector.load %arg7[%c0_14, %c0_15] : memref<8x1xf32, #tpu.memory_space<vmem>>, vector<8x1xf32>
    %53 = arith.maximumf %52, %51 : vector<8x1xf32>
    %54 = arith.subf %52, %53 : vector<8x1xf32>
    %55 = math.exp %54 : vector<8x1xf32>
    %56 = vector.broadcast %53 : vector<8x1xf32> to vector<8x512xf32>
    %57 = arith.subf %49, %56 : vector<8x512xf32>
    %58 = math.exp %57 : vector<8x512xf32>
    %c0_16 = arith.constant 0 : index
    %c0_17 = arith.constant 0 : index
    %59 = vector.load %arg8[%c0_16, %c0_17] : memref<8x1xf32, #tpu.memory_space<vmem>>, vector<8x1xf32>
    %60 = arith.mulf %55, %59 : vector<8x1xf32>
    %cst_18 = arith.constant dense<0.000000e+00> : vector<8xf32>
    %61 = vector.multi_reduction <add>, %58, %cst_18 [1] : vector<8x512xf32> to vector<8xf32>
    %62 = vector.shape_cast %61 : vector<8xf32> to vector<8x1xf32>
    %63 = arith.addf %60, %62 : vector<8x1xf32>
    %c0_19 = arith.constant 0 : index
    %c0_20 = arith.constant 0 : index
    %64 = vector.load %arg8[%c0_19, %c0_20] : memref<8x1xf32, #tpu.memory_space<vmem>>, vector<8x1xf32>
    tpu.vector_store %arg8[%c0_19, %c0_20], %63 {strides = array<i32>} : memref<8x1xf32, #tpu.memory_space<vmem>>, vector<8x1xf32>,
    %c0_21 = arith.constant 0 : index
    %c0_22 = arith.constant 0 : index
    %65 = vector.load %arg9[%c0_21, %c0_22] : memref<8x8xf32, #tpu.memory_space<vmem>>, vector<8x8xf32>
    %66 = vector.broadcast %55 : vector<8x1xf32> to vector<8x8xf32>
    %67 = arith.mulf %66, %65 : vector<8x8xf32>
    %cst_23 = arith.constant dense<0.000000e+00> : vector<8x8xf32>
    %68 = tpu.matmul %58, %41, %cst_23 {dimension_numbers = #tpu.dot_dimension_numbers<[1], [1], [0], [0], [0, 0, 1, 0], [], []>} : vector<8x512xf32>, vector<8x512xf32>, vector<8x8xf32> -> vector<8x8xf32>
    %69 = arith.addf %67, %68 : vector<8x8xf32>
    %c0_24 = arith.constant 0 : index
    %c0_25 = arith.constant 0 : index
    %70 = vector.load %arg9[%c0_24, %c0_25] : memref<8x8xf32, #tpu.memory_space<vmem>>, vector<8x8xf32>
    tpu.vector_store %arg9[%c0_24, %c0_25], %69 {strides = array<i32>} : memref<8x8xf32, #tpu.memory_space<vmem>>, vector<8x8xf32>,
    %c0_26 = arith.constant 0 : index
    %c0_27 = arith.constant 0 : index
    %71 = vector.load %arg7[%c0_26, %c0_27] : memref<8x1xf32, #tpu.memory_space<vmem>>, vector<8x1xf32>
    tpu.vector_store %arg7[%c0_26, %c0_27], %53 {strides = array<i32>} : memref<8x1xf32, #tpu.memory_space<vmem>>, vector<8x1xf32>,
    %c1_i32 = arith.constant 1 : i32
    %72 = arith.cmpi eq, %arg1, %c1_i32 : i32
    %73 = arith.extui %72 : i1 to i32
    %c0_i32_28 = arith.constant 0 : i32
    %74 = arith.cmpi ne, %73, %c0_i32_28 : i32
    scf.if %74 {
      %c0_29 = arith.constant 0 : index
      %c0_30 = arith.constant 0 : index
      %75 = vector.load %arg8[%c0_29, %c0_30] : memref<8x1xf32, #tpu.memory_space<vmem>>, vector<8x1xf32>
      %76 = tpu.reciprocal %75 {approx = true} : vector<8x1xf32> -> vector<8x1xf32>
      %c0_31 = arith.constant 0 : index
      %c0_32 = arith.constant 0 : index
      %77 = vector.load %arg9[%c0_31, %c0_32] : memref<8x8xf32, #tpu.memory_space<vmem>>, vector<8x8xf32>
      %78 = vector.broadcast %76 : vector<8x1xf32> to vector<8x8xf32>
      %79 = arith.mulf %77, %78 : vector<8x8xf32>
      %80 = tpu.transpose %79, [1, 0] : vector<8x8xf32> -> vector<8x8xf32>
      %c0_33 = arith.constant 0 : index
      %c0_34 = arith.constant 0 : index
      %c0_35 = arith.constant 0 : index
      %81 = vector.load %arg6[%c0_33, %c0_34, %c0_35] : memref<1x8x8xf32, #tpu.memory_space<vmem>>, vector<1x8x8xf32>
      %82 = vector.shape_cast %81 : vector<1x8x8xf32> to vector<8x8xf32>
      %83 = vector.shape_cast %80 : vector<8x8xf32> to vector<1x8x8xf32>
      tpu.vector_store %arg6[%c0_33, %c0_34, %c0_35], %83 {strides = array<i32>} : memref<1x8x8xf32, #tpu.memory_space<vmem>>, vector<1x8x8xf32>,
    } else {
    }
    return
  }
  func.func @transform_0(%arg0: i32, %arg1: i32) -> (i32, i32, i32) {
    %c0_i32 = arith.constant 0 : i32
    %c0_i32_0 = arith.constant 0 : i32
    return %arg0, %c0_i32, %arg1 : i32, i32, i32
  }
  func.func @transform_1(%arg0: i32, %arg1: i32) -> (i32, i32, i32) {
    %c1_i32 = arith.constant 1 : i32
    %0 = arith.addi %arg1, %c1_i32 : i32
    %c2_i32 = arith.constant 2 : i32
    %1 = arith.muli %0, %c2_i32 : i32
    %c0_i32 = arith.constant 0 : i32
    %c0_i32_0 = arith.constant 0 : i32
    return %arg0, %c0_i32, %1 : i32, i32, i32
  }
  func.func @transform_2(%arg0: i32, %arg1: i32) -> (i32, i32) {
    %c0_i32 = arith.constant 0 : i32
    %c0_i32_0 = arith.constant 0 : i32
    return %c0_i32, %arg1 : i32, i32
  }
  func.func @transform_3(%arg0: i32, %arg1: i32) -> (i32, i32) {
    %c0_i32 = arith.constant 0 : i32
    %c0_i32_0 = arith.constant 0 : i32
    %c0_i32_1 = arith.constant 0 : i32
    return %c0_i32, %c0_i32_0 : i32, i32
  }
  func.func @transform_4(%arg0: i32, %arg1: i32) -> (i32, i32, i32) {
    %c0_i32 = arith.constant 0 : i32
    %c0_i32_0 = arith.constant 0 : i32
    %c0_i32_1 = arith.constant 0 : i32
    return %arg0, %c0_i32, %c0_i32_0 : i32, i32, i32
  }
}

</mosaic_0001>

<bundles_post_ra>
// kernel: semantic_map_generation.1
= control target key start
LH: loop header
LB: loop body
LE: loop exit
PB: predicated region body
PF: predicated region fallthrough
CT: control target
= control target key end

     0   :  { %s1675_s15 = smov 0   ;;  %s1677_s16 = smov 0   ;;  %s2410_s0 = inlined_call_operand.vmem [shape: bf16[2,4,1280], index: 0, kind: input, shape index: {}, may-alias: {0,1}]   ;;  %s2411_s1 = inlined_call_operand.vmem [shape: bf16[2,4,1280], index: 1, kind: input, shape index: {}, may-alias: {0,1}]   ;;  %s2412_s2 = inlined_call_operand.vmem [shape: f32[1,1280], index: 2, kind: input, shape index: {}]   ;;  %s2413_s3 = inlined_call_operand.vmem [shape: bf16[16,128], index: 3, kind: input, shape index: {}]   ;;  %s2414_s4 = inlined_call_operand.vmem [shape: f32[2,8,8], index: 4, kind: output, shape index: {}]  }
   0x1   :  { %s1679_s17 = smov 0   ;;  %s1681_s18 = smov 0  }
   0x2   :  { %s1683_s19 = smov 0  }
   0x3 LB: > { %s23_s20 = sadd.s32 1, %s1612_s17  ;;  %s26_s21 = sadd.s32 1, %s1616_s18  ;;  %s1620_s19 = sphi %s1683_s19, %s14_s19   ;;  %s1616_s18 = sphi %s1681_s18, %s2458_s18   ;;  %s1612_s17 = sphi %s1679_s17, %s2457_s17   ;;  %s1608_s16 = sphi %s1677_s16, %s2456_s16   ;;  %s1604_s15 = sphi %s1675_s15, %s2455_s15  }
   0x4   : > { %p24_p0 = scmp.ge.s32.totalorder %s23_s20, 2  ;;  %p1472_p1 = scmp.ge.s32.totalorder %s1620_s19, 1 }
   0x5   : > { %p232_p2 = scmp.lt.s32.totalorder %s1620_s19, 5 }
   0x6   : > { %s2460_s20 = smov (%p24_p0, %s23_s20), 0  ;;  %s2462_s21 = smov (!%p24_p0, %s26_s21), %s1616_s18 }
   0x7   : > { %p233_p3 = pnand %p1472_p1, %p232_p2  ;;  %p28_p4 = scmp.ge.s32.totalorder %s2462_s21, 2 }
   0x9   : > { %s2464_s21 = smov (%p28_p4, %s2462_s21), 0  ;;  %236 = sbr.rel (%p233_p3) target bundleno = 1476 (0x5c4), region = 36 }
   0xe   : > { %s1473_s22 = sshll.u32 %s1604_s15, 2  ;;  %p289_p5 = scmp.lt.s32.totalorder %s1608_s16, 1 }
   0xf   : > { %p291_p6 = scmp.lt.s32.totalorder %s1473_s22, 9  ;;  %s1494_s23 = sadd.s32 4, %s1473_s22 }
  0x10   : > { %s2466_s16 = smov (!%p289_p5, %s1608_s16), 1  ;;  %p307_p7 = scmp.lt.s32.totalorder %s1494_s23, 9 }
  0x11   : > { %s2468_s22 = smov (!%p291_p6, %s1473_s22), 9  ;;  %s1495_s24 = smul.u32 10, %s2466_s16 }
  0x12   : > { %s323_s27 = scalar_lea.vmem %s2412_s2, %s2468_s22  ;;  %s1479_s28 = sshll.u32 %s2466_s16, 3 }
  0x13   : > { %s294_s29 = sadd.s32 %s1495_s24, %s2468_s22  ;;  %s1718_s6 = scalar_lea.vmem %s2414_s4, %s1479_s28 }
  0x14   : > { %s1474_s7 = sshll.u32 %s294_s29, 1  ;;  %s2470_s23 = smov (!%p307_p7, %s1494_s23), 9 }
  0x15   : > { %s296_s10 = scalar_lea.vmem %s2410_s0, %s1474_s7  ;;  %s310_s11 = sadd.s32 %s1495_s24, %s2470_s23 }
  0x16   : > { %s1477_s12 = sshll.u32 %s310_s11, 1  ;;  %p1480_p8 = scmp.ne.s32.totalorder %s1604_s15, 0 }
  0x17   : > { %s312_s25 = scalar_lea.vmem %s2411_s1, %s1477_s12 }
  0x18   : > { %337 = sbr.rel (%p1480_p8) target bundleno = 32 (0x20), region = 40 }
  0x1d   : > { %vm338_vm0 = vcmask 7168   ;;  %vm341_vm1 = vcmask 64512   ;;  %v1622_v0 = vmov -1e+30   ;;  %v1623_v1 = vmov 0.0  }
  0x1e   : > { %339 = vst.msk [vmem:[#allocation2] sm:$0xff] %vm338_vm0, %v1622_v0  ;;  %340 = vst.msk [vmem:[#allocation3] sm:$0xff] %vm338_vm0, %v1623_v1 }
  0x1f   : > { %342 = vst.msk [vmem:[#allocation4] sm:$0xff] %vm341_vm1, %v1623_v1 }
  0x20 PF: > { %v1727_v2 = vld.sshfl [vmem:[%s312_s25] sm:$0x33 pattern:$0x76325410]  ;;  %v350_v3 = vlaneseq  ;;  %v1624_v6 = vmov 1983009808  }
  0x21   : > { %v1730_v4 = vrot.slane %v1727_v2, 6  ;;  %v343_v5 = vld [vmem:[%s296_s10] sm:$0xff]  ;;  %v348_v7 = vunpack.c.l.s4 %v1624_v6  ;;  %s1625_s16 = smov 28   ;;  %s1626_s23 = smov 29   ;;  %v1761_v18 = vcombine.high %v1727_v2, %v1727_v2  ;;  %v1780_v22 = vrot.slane %v1727_v2, 4 }
  0x22   : > { %v1732_v8 = vshrl.u32 %v350_v3, 7  ;;  %v346_v9 = vcombine.high %v343_v5, %v343_v5  ;;  %s1627_s24 = smov 27   ;;  %s1628_s26 = smov 47   ;;  %v1809_v24 = vrot.slane %v1727_v2, 2  ;;  %v2415_v29 = vmov 0  }
  0x23   : > { %2432 = vst [vmem:[#allocation5_spill] sm:$0xff] %v1730_v4  ;;  %515 = vrot.lane.b32.xlu1 %v1730_v4, %s1625_s16  ;;  %v349_v10 = vunpack.c.0.s8 %v348_v7  ;;  %v790_v19 = vrot.slane %v1761_v18, 6  ;;  %s1629_s28 = smov 39   ;;  %s1630_s29 = smov 38   ;;  %v759_v27 = vrot.slane %v1761_v18, 2  ;;  %1054 = vmatprep.mubr.bf16.mxu0 %v2415_v29  ;;  %vm801_vm2 = vcmask 318464  }
  0x24   : > { %2433 = vst [vmem:[#allocation6_spill] sm:$0xff] %v1732_v8  ;;  %s1631_s30 = smov 37   ;;  %2436 = vst [vmem:[#allocation9_spill] sm:$0xff] %v1809_v24  ;;  %s1632_s5 = smov 127   ;;  %1097 = vmatprep.mubr.bf16.mxu1 %v2415_v29  ;;  %1565 = vset.pattern.permute.xlu1 %v2415_v29  ;;  %vm816_vm3 = vcmask 310272   ;;  %vm785_vm4 = vcmask 384000  }
  0x25   : > { %v352_v11 = vsub.s32 %v349_v10, %v1732_v8  ;;  %s1633_s7 = smov 49   ;;  %1566 = vset.pattern.permute.xlu0 %v2415_v29  ;;  %s1635_s8 = smov 48   ;;  %vm612_vm5 = vcmask 1041408   ;;  %vm625_vm6 = vcmask 1043456   ;;  %vm831_vm7 = vcmask 302080  }
  0x26   : > { %s1636_s9 = smov 18   ;;  %s1637_s10 = smov 7   ;;  %vm532_vm8 = vcmask 220160   ;;  %vm634_vm9 = vcmask 1045504   ;;  %vm846_vm10 = vcmask 236544   ;;  %vm517_vm11 = vcmask 228352  }
  0x27   : > { %v1737_v12 = vrot.slane %v343_v5, %v352_v11  ;;  %v1739_v13 = vrot.slane %v346_v9, %v352_v11  ;;  %vm754_vm12 = vcmask 400384   ;;  %vm387_vm13 = vcmask 1039360   ;;  %s1638_s11 = smov 17   ;;  %s1639_s12 = smov 16  }
  0x28   : > { %vm770_vm14 = vcmask 392192   ;;  %s1640_s13 = smov 8   ;;  %s1641_s14 = smov 106   ;;  %vm988_vm15 = vcmask 56320   ;;  %vm562_vm0 = vcmask 146432   ;;  %vm577_vm1 = vcmask 138240  }
  0x29   : > { %838 = vrot.lane.b32.xlu1 %v1739_v13, %s1626_s23  ;;  %v1744_v14 = vcombine.high %v1739_v13, %v1739_v13  ;;  %v1747_v15 = vrot.slane %v1739_v13, 6  ;;  %v1751_v16 = vcombine.high %v1737_v12, %v1737_v12  ;;  %v1773_v21 = vrot.slane %v1739_v13, 4  ;;  %s1642_s25 = smov 26   ;;  %p1483_p9 = scmp.ne.s32.totalorder %s1604_s15, 1 }
  0x2a   : > { %v1804_v23 = vrot.slane %v1739_v13, 2  ;;  %v1825_v28 = vrot.slane %v1737_v12, 6 }
  0x2b   : > { %2434 = vst [vmem:[#allocation7_spill] sm:$0xff] %v1751_v16  ;;  %511 = vrot.lane.b32.xlu0 %v1747_v15, %s1625_s16  ;;  %v1757_v17 = vrot.slane %v1744_v14, 6  ;;  %v1769_v20 = vrot.slane %v1751_v16, 6  ;;  %v1813_v25 = vrot.slane %v1751_v16, 2  ;;  %v1818_v26 = vrot.slane %v1744_v14, 2 }
  0x2c   : > { %2435 = vst [vmem:[#allocation8_spill] sm:$0xff] %v1804_v23 }
  0x2d   : > { %842 = vrot.lane.b32.xlu1 %v1727_v2, %s1626_s23 }
  0x2f   : > { %836 = vrot.lane.b32.xlu0 %v1751_v16, %s1626_s23 }
  0x31   : > { %513 = vrot.lane.b32.xlu1 %v1757_v17, %s1625_s16 }
  0x33   : > { %840 = vrot.lane.b32.xlu0 %v1744_v14, %s1626_s23 }
  0x35   : > { %851 = vrot.lane.b32.xlu1 %v790_v19, %s1625_s16 }
  0x37   : > { %509 = vrot.lane.b32.xlu0 %v1769_v20, %s1625_s16 }
  0x39   : > { %526 = vrot.lane.b32.xlu1 %v1773_v21, %s1627_s24 }
  0x3b   : > { %844 = vrot.lane.b32.xlu0 %v1761_v18, %s1626_s23  ;;  %s1644_s23 = smov 116  }
  0x3d   : > { %530 = vrot.lane.b32.xlu1 %v1780_v22, %s1627_s24 }
  0x3f   : > { %524 = vrot.lane.b32.xlu0 %v1751_v16, %s1627_s24 }
  0x41   : > { %775 = vrot.lane.b32.xlu1 %v1751_v16, %s1628_s26 }
  0x43   : > { %528 = vrot.lane.b32.xlu0 %v1744_v14, %s1627_s24 }
  0x45   : > { %779 = vrot.lane.b32.xlu1 %v1744_v14, %s1628_s26 }
  0x47   : > { %854 = vrot.lane.b32.xlu0 %v1761_v18, %s1627_s24 }
  0x49   : > { %783 = vrot.lane.b32.xlu1 %v1761_v18, %s1628_s26 }
  0x4b   : > { %777 = vrot.lane.b32.xlu0 %v1739_v13, %s1628_s26 }
  0x4d   : > { %793 = vrot.lane.b32.xlu1 %v1747_v15, %s1629_s28 }
  0x4f   : > { %781 = vrot.lane.b32.xlu0 %v1727_v2, %s1628_s26  ;;  %s1645_s26 = smov 108  }
  0x51   : > { %797 = vrot.lane.b32.xlu1 %v1730_v4, %s1629_s28 }
  0x53   : > { %791 = vrot.lane.b32.xlu0 %v1769_v20, %s1629_s28 }
  0x55   : > { %806 = vrot.lane.b32.xlu1 %v1751_v16, %s1630_s29 }
  0x57   : > { %795 = vrot.lane.b32.xlu0 %v1757_v17, %s1629_s28 }
  0x59   : > { %810 = vrot.lane.b32.xlu1 %v1744_v14, %s1630_s29 }
  0x5b   : > { %799 = vrot.lane.b32.xlu0 %v790_v19, %s1629_s28  ;;  %s1647_s28 = smov 126  }
  0x5d   : > { %814 = vrot.lane.b32.xlu1 %v1761_v18, %s1630_s29 }
  0x5f   : > { %808 = vrot.lane.b32.xlu0 %v1773_v21, %s1630_s29 }
  0x61   : > { %823 = vrot.lane.b32.xlu1 %v1804_v23, %s1631_s30 }
  0x63   : > { %812 = vrot.lane.b32.xlu0 %v1780_v22, %s1630_s29  ;;  %s1648_s29 = smov 118  }
  0x65   : > { %827 = vrot.lane.b32.xlu1 %v1809_v24, %s1631_s30 }
  0x67   : > { %821 = vrot.lane.b32.xlu0 %v1813_v25, %s1631_s30 }
  0x69   : > { %379 = vrot.lane.b32.xlu1 %v1769_v20, %s1632_s5 }
  0x6b   : > { %825 = vrot.lane.b32.xlu0 %v1818_v26, %s1631_s30 }
  0x6d   : > { %383 = vrot.lane.b32.xlu1 %v1757_v17, %s1632_s5 }
  0x6f   : > { %829 = vrot.lane.b32.xlu0 %v759_v27, %s1631_s30 }
  0x71   : > { %377 = vrot.lane.b32.xlu1 %v1825_v28, %s1632_s5 }
  0x73   : > { %381 = vrot.lane.b32.xlu0 %v1747_v15, %s1632_s5 }
  0x75   : > { %746 = vrot.lane.b32.xlu1 %v1773_v21, %s1633_s7 }
  0x77   : > { %385 = vrot.lane.b32.xlu0 %v1730_v4, %s1632_s5 }
  0x79   : > { %750 = vrot.lane.b32.xlu1 %v1780_v22, %s1633_s7 }
  0x7b   : > { %744 = vrot.lane.b32.xlu0 %v1751_v16, %s1633_s7 }
  0x7d   : > { %760 = vrot.lane.b32.xlu1 %v1813_v25, %s1635_s8 }
  0x7f   : > { %748 = vrot.lane.b32.xlu0 %v1744_v14, %s1633_s7 }
  0x81   : > { %764 = vrot.lane.b32.xlu1 %v1818_v26, %s1635_s8 }
  0x83   : > { %752 = vrot.lane.b32.xlu0 %v1761_v18, %s1633_s7 }
  0x85   : > { %768 = vrot.lane.b32.xlu1 %v759_v27, %s1635_s8 }
  0x87   : > { %762 = vrot.lane.b32.xlu0 %v1804_v23, %s1635_s8 }
  0x89   : > { %554 = vrot.lane.b32.xlu1 %v1751_v16, %s1636_s9 }
  0x8b   : > { %766 = vrot.lane.b32.xlu0 %v1809_v24, %s1635_s8 }
  0x8d   : > { %558 = vrot.lane.b32.xlu1 %v1744_v14, %s1636_s9 }
  0x8f   : > { %986 = vrot.lane.b32.xlu0 %v2415_v29, %s1637_s10 }
  0x93   : > { %556 = vrot.lane.b32.xlu0 %v1739_v13, %s1636_s9 }
  0x95   : > { %v1851_v30 = vpop.permute.xlu1 %515 }
  0x9b   : > { %v1853_v31 = vpop.permute.xlu1 %838 }
  0x9d   : > { %v1855_v32 = vpop.permute.xlu0 %511 }
  0x9f   : > { %v1857_v33 = vpop.permute.xlu1 %842 }
  0xa1   : > { %v837_v34 = vpop.permute.xlu0 %836 }
  0xa3   : > { %v1859_v35 = vpop.permute.xlu1 %513 }
  0xa5   : > { %v1861_v36 = vpop.permute.xlu0 %840 }
  0xa7   : > { %v1863_v37 = vpop.permute.xlu1 %851 }
  0xa8   : > { %v853_v4 = vsel %vm517_vm11, %v1851_v30, %v1863_v37 }
  0xa9   : > { %v1865_v38 = vpop.permute.xlu0 %509 }
  0xaa   : > { %2437 = vst [vmem:[#allocation10_spill] sm:$0xff] %v1865_v38  ;;  %v917_v27 = vsel %vm612_vm5, %v837_v34, %v1865_v38 }
  0xab   : > { %v1867_v39 = vpop.permute.xlu1 %526 }
  0xad   : > { %v1869_v40 = vpop.permute.xlu0 %844 }
  0xaf   : > { %v1871_v41 = vpop.permute.xlu1 %530 }
  0xb1   : > { %v1873_v42 = vpop.permute.xlu0 %524 }
  0xb2   : > { %2438 = vst [vmem:[#allocation11_spill] sm:$0xff] %v1873_v42 }
  0xb3   : > { %v1875_v43 = vpop.permute.xlu1 %775 }
  0xb5   : > { %v1877_v44 = vpop.permute.xlu0 %528 }
  0xb7   : > { %v1879_v45 = vpop.permute.xlu1 %779 }
  0xb9   : > { %v1881_v46 = vpop.permute.xlu0 %854 }
  0xbb   : > { %v784_v47 = vpop.permute.xlu1 %783 }
  0xbd   : > { %v1883_v48 = vpop.permute.xlu0 %777 }
  0xbf   : > { %v1885_v49 = vpop.permute.xlu1 %793 }
  0xc1   : > { %v1887_v50 = vpop.permute.xlu0 %781 }
  0xc2   : > { %v789_v6 = vsel %vm785_vm4, %v1887_v50, %v784_v47  ;;  %v1933_v47 = vsel %vm517_vm11, %v1865_v38, %v1855_v32 }
  0xc3   : > { %v1889_v51 = vpop.permute.xlu1 %797  ;;  %2439 = vst [vmem:[#allocation12_spill] sm:$0xff] %v1933_v47 }
  0xc5   : > { %v1891_v52 = vpop.permute.xlu0 %791 }
  0xc7   : > { %v1893_v53 = vpop.permute.xlu1 %806 }
  0xc9   : > { %v1895_v54 = vpop.permute.xlu0 %795 }
  0xca   : > { %v803_v8 = vsel %vm801_vm2, %v1885_v49, %v1895_v54 }
  0xcb   : > { %v1897_v55 = vpop.permute.xlu1 %810 }
  0xcd   : > { %v800_v56 = vpop.permute.xlu0 %799 }
  0xce   : > { %v805_v1 = vsel %vm801_vm2, %v1889_v51, %v800_v56  ;;  %v928_v56 = vsel %vm625_vm6, %v917_v27, %v1873_v42  ;;  %v1966_v27 = vsel %vm517_vm11, %v1859_v35, %v1851_v30 }
  0xcf   : > { %v815_v57 = vpop.permute.xlu1 %814  ;;  %v894_v7 = vsel %vm612_vm5, %v789_v6, %v805_v1  ;;  %v1943_v1 = vsel %vm532_vm8, %v1873_v42, %v1867_v39  ;;  %2442 = vst [vmem:[#allocation15_spill] sm:$0xff] %v1966_v27 }
  0xd0   : > { %2440 = vst [vmem:[#allocation13_spill] sm:$0xff] %v1943_v1 }
  0xd1   : > { %v1899_v58 = vpop.permute.xlu0 %808 }
  0xd3   : > { %v1901_v59 = vpop.permute.xlu1 %823 }
  0xd5   : > { %v1903_v60 = vpop.permute.xlu0 %812 }
  0xd6   : > { %v820_v3 = vsel %vm816_vm3, %v1903_v60, %v815_v57 }
  0xd7   : > { %v1905_v61 = vpop.permute.xlu1 %827  ;;  %v904_v11 = vsel %vm625_vm6, %v894_v7, %v820_v3  ;;  %v847_v3 = vsel %vm846_vm10, %v837_v34, %v1853_v31  ;;  %v935_v7 = vsel %vm634_vm9, %v928_v56, 0  ;;  %v1961_v34 = vsel %vm532_vm8, %v1877_v44, %v1871_v41 }
  0xd8   : > { %2441 = vst [vmem:[#allocation14_spill] sm:$0xff] %v1961_v34 }
  0xd9   : > { %v1907_v62 = vpop.permute.xlu0 %821 }
  0xdb   : > { %v1909_v63 = vpop.permute.xlu1 %379 }
  0xdd   : > { %v1911_v0 = vpop.permute.xlu0 %825 }
  0xdf   : > { %v1917_v5 = vpop.permute.xlu1 %383 }
  0xe1   : > { %v830_v9 = vpop.permute.xlu0 %829 }
  0xe2   : > { %v835_v10 = vsel %vm831_vm7, %v1905_v61, %v830_v9  ;;  %v919_v9 = vsel %vm612_vm5, %v847_v3, %v1933_v47 }
  0xe3   : > { %v1925_v18 = vpop.permute.xlu1 %377  ;;  %v914_v19 = vsel %vm634_vm9, %v904_v11, %v835_v10  ;;  %v849_v10 = vsel %vm846_vm10, %v1861_v36, %v1857_v33  ;;  %v929_v11 = vsel %vm625_vm6, %v919_v9, %v1943_v1  ;;  %v818_v1 = vsel %vm816_vm3, %v1899_v58, %v1897_v55 }
  0xe4   : > { %974 = vrot.lane.b32.xlu1 %v914_v19, %s1637_s10  ;;  %v936_v3 = vsel %vm634_vm9, %v929_v11, 0 }
  0xe5   : > { %v1938_v57 = vpop.permute.xlu0 %381 }
  0xe7   : > { %v1947_v6 = vpop.permute.xlu1 %746 }
  0xe8   : > { %976 = vrot.lane.b32.xlu1 %v935_v7, %s1637_s10  ;;  %v923_v7 = vsel %vm612_vm5, %v849_v10, %v1966_v27  ;;  %v787_v10 = vsel %vm785_vm4, %v1883_v48, %v1879_v45 }
  0xe9   : > { %v386_v19 = vpop.permute.xlu0 %385  ;;  %v931_v9 = vsel %vm625_vm6, %v923_v7, %v1961_v34  ;;  %v888_v7 = vsel %vm612_vm5, %v787_v10, %v803_v8 }
  0xea   : > { %v938_v11 = vsel %vm634_vm9, %v931_v9, 0  ;;  %v900_v47 = vsel %vm625_vm6, %v888_v7, %v818_v1  ;;  %v391_v10 = vsel %vm387_vm13, %v1917_v5, %v386_v19 }
  0xeb   : > { %v751_v56 = vpop.permute.xlu1 %750 }
  0xec   : > { %978 = vrot.lane.b32.xlu1 %v936_v3, %s1637_s10  ;;  %v833_v3 = vsel %vm831_vm7, %v1901_v59, %v1911_v0 }
  0xed   : > { %v1974_v29 = vpop.permute.xlu0 %744  ;;  %v910_v9 = vsel %vm634_vm9, %v900_v47, %v833_v3 }
  0xee   : > { %v755_v8 = vsel %vm754_vm12, %v1974_v29, %v1947_v6 }
  0xef   : > { %v1991_v34 = vpop.permute.xlu1 %760 }
  0xf0   : > { %982 = vrot.lane.b32.xlu1 %v938_v11, %s1637_s10  ;;  %v389_v11 = vsel %vm387_vm13, %v1909_v63, %v1938_v57 }
  0xf1   : > { %v1993_v27 = vpop.permute.xlu0 %748  ;;  %v2008_v1 = vsel %vm612_vm5, %v1751_v16, %v389_v11  ;;  %v850_v16 = vsel %vm846_vm10, %v1857_v33, %v1869_v40 }
  0xf2   : > { %v863_v7 = vsel %vm625_vm6, %v2008_v1, %v755_v8  ;;  %v856_v8 = vsel %vm532_vm8, %v1871_v41, %v1881_v46  ;;  %v926_v41 = vsel %vm612_vm5, %v850_v16, %v853_v4  ;;  %v848_v4 = vsel %vm846_vm10, %v1853_v31, %v1861_v36 }
  0xf3   : > { %v1998_v42 = vpop.permute.xlu1 %764  ;;  %v388_v16 = vsel %vm387_vm13, %v1925_v18, %v1909_v63  ;;  %vm442_vm10 = vcmask 957440  }
  0xf4   : > { %970 = vrot.lane.b32.xlu1 %v910_v9, %s1637_s10  ;;  %v757_v9 = vsel %vm754_vm12, %v1993_v27, %v751_v56  ;;  %v2078_v36 = vsel %vm612_vm5, %v1737_v12, %v388_v16 }
  0xf5   : > { %v753_v38 = vpop.permute.xlu0 %752 }
  0xf6   : > { %v758_v24 = vsel %vm754_vm12, %v751_v56, %v753_v38  ;;  %v2035_v38 = vsel %vm612_vm5, %v1744_v14, %v391_v10  ;;  %v859_v56 = vsel %vm612_vm5, %v1727_v2, %v386_v19  ;;  %v933_v19 = vsel %vm625_vm6, %v926_v41, %v856_v8 }
  0xf7   : > { %v769_v23 = vpop.permute.xlu1 %768  ;;  %v867_v30 = vsel %vm625_vm6, %v2035_v38, %v757_v9  ;;  %v869_v37 = vsel %vm625_vm6, %v859_v56, %v758_v24  ;;  %v939_v24 = vsel %vm634_vm9, %v933_v19, 0  ;;  %v2067_v9 = vsel %vm532_vm8, %v1867_v39, %v1877_v44 }
  0xf8   : > { %v861_v39 = vsel %vm625_vm6, %v2078_v36, %v1974_v29  ;;  %v817_v44 = vsel %vm816_vm3, %v1893_v53, %v1899_v58  ;;  %v786_v56 = vsel %vm785_vm4, %v1875_v43, %v1883_v48  ;;  %v788_v58 = vsel %vm785_vm4, %v1879_v45, %v1887_v50 }
  0xf9   : > { %v2010_v47 = vpop.permute.xlu0 %762  ;;  %v871_v8 = vsel %vm634_vm9, %v861_v39, %v1991_v34  ;;  %v756_v45 = vsel %vm754_vm12, %v1947_v6, %v1993_v27  ;;  %v2171_v6 = vrot.slane %v1737_v12, 4  ;;  %v2446_v27 = vld [vmem:[#allocation9_spill] sm:$0xff]  ;;  %vm502_vm4 = vcmask 867328  }
  0xfa   : > { %v771_v3 = vsel %vm770_vm14, %v1991_v34, %v2010_v47  ;;  %v2445_v34 = vld [vmem:[#allocation8_spill] sm:$0xff]  ;;  %vm487_vm12 = vcmask 875520  }
  0xfb   : > { %v873_v11 = vsel %vm634_vm9, %v863_v7, %v771_v3 }
  0xfc   : > { %958 = vrot.lane.b32.xlu1 %v873_v11, %s1637_s10  ;;  %v2072_v11 = vsel %vm517_vm11, %v1855_v32, %v1859_v35  ;;  %v802_v35 = vsel %vm801_vm2, %v1891_v52, %v1885_v49 }
  0xfd   : > { %v767_v3 = vpop.permute.xlu0 %766  ;;  %v921_v18 = vsel %vm612_vm5, %v848_v4, %v2072_v11  ;;  %v885_v49 = vsel %vm612_vm5, %v786_v56, %v802_v35 }
  0xfe   : > { %v773_v33 = vsel %vm770_vm14, %v1998_v42, %v767_v3  ;;  %v774_v40 = vsel %vm770_vm14, %v767_v3, %v769_v23  ;;  %v882_v23 = vsel %vm612_vm5, %v1875_v43, %v1891_v52  ;;  %v930_v32 = vsel %vm625_vm6, %v921_v18, %v2067_v9 }
  0xff   : > { %v877_v46 = vsel %vm634_vm9, %v867_v30, %v773_v33  ;;  %v879_v10 = vsel %vm634_vm9, %v869_v37, %v774_v40  ;;  %v896_v31 = vsel %vm625_vm6, %v882_v23, %v1893_v53  ;;  %v937_v29 = vsel %vm634_vm9, %v930_v32, 0 }
 0x100   : > { %962 = vrot.lane.b32.xlu1 %v877_v46, %s1637_s10  ;;  %964 = vrot.lane.b32.xlu0 %v879_v10, %s1637_s10  ;;  %v906_v63 = vsel %vm634_vm9, %v896_v31, %v1907_v62  ;;  %v832_v3 = vsel %vm831_vm7, %v1907_v62, %v1901_v59  ;;  %v804_v52 = vsel %vm801_vm2, %v1895_v54, %v1889_v51  ;;  %vm592_vm2 = vcmask 130048  }
 0x101   : > { %v987_v7 = vpop.permute.xlu0 %986  ;;  %v898_v53 = vsel %vm625_vm6, %v885_v49, %v817_v44  ;;  %v819_v43 = vsel %vm816_vm3, %v1897_v55, %v1903_v60  ;;  %v834_v59 = vsel %vm831_vm7, %v1911_v0, %v1905_v61  ;;  %v891_v51 = vsel %vm612_vm5, %v788_v58, %v804_v52 }
 0x102   : > { %1022 = vmatprep.subr.bf16.mxu0 %v987_v7  ;;  %1065 = vmatprep.subr.bf16.mxu1 %v987_v7  ;;  %v908_v48 = vsel %vm634_vm9, %v898_v53, %v832_v3  ;;  %v390_v54 = vsel %vm387_vm13, %v1938_v57, %v1917_v5  ;;  %v902_v55 = vsel %vm625_vm6, %v891_v51, %v819_v43  ;;  %v2443_v5 = vld [vmem:[#allocation5_spill] sm:$0xff]  ;;  %v2444_v57 = vld [vmem:[#allocation7_spill] sm:$0xff]  ;;  %vm607_vm3 = vcmask 64512  }
 0x103   : > { %1023 = vmatpush1.bf16.msra.mxu0 %v987_v7  ;;  %1066 = vmatpush1.bf16.msra.mxu1 %v987_v7  ;;  %v912_v50 = vsel %vm634_vm9, %v902_v55, %v834_v59  ;;  %v772_v60 = vsel %vm770_vm14, %v2010_v47, %v1998_v42  ;;  %v2143_v61 = vsel %vm612_vm5, %v1739_v13, %v390_v54  ;;  %v2157_v42 = vrot.slane %v1737_v12, 2  ;;  %v2185_v47 = vpop.permute.xlu1 %554 }
 0x104   : > { %569 = vrot.lane.b32.xlu1 %v1769_v20, %s1638_s11  ;;  %984 = vrot.lane.b32.xlu0 %v939_v24, %s1637_s10  ;;  %v865_v62 = vsel %vm625_vm6, %v2143_v61, %v756_v45  ;;  %vm547_vm7 = vcmask 211968   ;;  %vm407_vm13 = vcmask 1031168  }
 0x105   : > { %v875_v0 = vsel %vm634_vm9, %v865_v62, %v772_v60 }
 0x107   : > { %v2191_v33 = vpop.permute.xlu1 %558 }
 0x108   : > { %573 = vrot.lane.b32.xlu1 %v1757_v17, %s1638_s11  ;;  %966 = vrot.lane.b32.xlu0 %v906_v63, %s1637_s10 }
 0x10c   : > { %956 = vrot.lane.b32.xlu1 %v871_v8, %s1637_s10  ;;  %980 = vrot.lane.b32.xlu0 %v937_v29, %s1637_s10 }
 0x110   : > { %567 = vrot.lane.b32.xlu1 %v1825_v28, %s1638_s11  ;;  %968 = vrot.lane.b32.xlu0 %v908_v48, %s1637_s10 }
 0x114   : > { %586 = vrot.lane.b32.xlu1 %v1773_v21, %s1639_s12  ;;  %972 = vrot.lane.b32.xlu0 %v912_v50, %s1637_s10 }
 0x118   : > { %590 = vrot.lane.b32.xlu1 %v1780_v22, %s1639_s12  ;;  %960 = vrot.lane.b32.xlu0 %v875_v0, %s1637_s10 }
 0x11c   : > { %599 = vrot.lane.b32.xlu1 %v1813_v25, %s1640_s13  ;;  %560 = vrot.lane.b32.xlu0 %v1727_v2, %s1636_s9 }
 0x120   : > { %603 = vrot.lane.b32.xlu1 %v1818_v26, %s1640_s13  ;;  %571 = vrot.lane.b32.xlu0 %v1747_v15, %s1638_s11 }
 0x124   : > { %597 = vrot.lane.b32.xlu1 %v2157_v42, %s1640_s13  ;;  %575 = vrot.lane.b32.xlu0 %v2443_v5, %s1638_s11 }
 0x128   : > { %496 = vrot.lane.b32.xlu1 %v1739_v13, %s1641_s14  ;;  %552 = vrot.lane.b32.xlu0 %v1737_v12, %s1636_s9 }
 0x12c   : > { %500 = vrot.lane.b32.xlu1 %v1727_v2, %s1641_s14  ;;  %584 = vrot.lane.b32.xlu0 %v2444_v57, %s1639_s12 }
 0x130   : > { %507 = vrot.lane.b32.xlu1 %v1825_v28, %s1625_s16  ;;  %588 = vrot.lane.b32.xlu0 %v1744_v14, %s1639_s12  ;;  %s1643_s16 = smov 117  }
 0x134   : > { %582 = vrot.lane.b32.xlu0 %v2171_v6, %s1639_s12  ;;  %539 = vrot.lane.b32.xlu1 %v1813_v25, %s1642_s25 }
 0x138   : > { %601 = vrot.lane.b32.xlu0 %v2445_v34, %s1640_s13  ;;  %543 = vrot.lane.b32.xlu1 %v1818_v26, %s1642_s25 }
 0x13c   : > { %605 = vrot.lane.b32.xlu0 %v2446_v27, %s1640_s13  ;;  %537 = vrot.lane.b32.xlu1 %v2157_v42, %s1642_s25 }
 0x140   : > { %494 = vrot.lane.b32.xlu0 %v2444_v57, %s1641_s14  ;;  %436 = vrot.lane.b32.xlu1 %v1739_v13, %s1643_s16 }
 0x144   : > { %498 = vrot.lane.b32.xlu0 %v1744_v14, %s1641_s14  ;;  %440 = vrot.lane.b32.xlu1 %v1727_v2, %s1643_s16 }
 0x148   : > { %492 = vrot.lane.b32.xlu0 %v1737_v12, %s1641_s14  ;;  %451 = vrot.lane.b32.xlu1 %v1747_v15, %s1644_s23 }
 0x14c   : > { %522 = vrot.lane.b32.xlu0 %v2171_v6, %s1627_s24  ;;  %455 = vrot.lane.b32.xlu1 %v2443_v5, %s1644_s23  ;;  %s1646_s24 = smov 107  }
 0x150   : > { %541 = vrot.lane.b32.xlu0 %v2445_v34, %s1642_s25  ;;  %447 = vrot.lane.b32.xlu1 %v1825_v28, %s1644_s23 }
 0x154   : > { %545 = vrot.lane.b32.xlu0 %v2446_v27, %s1642_s25  ;;  %466 = vrot.lane.b32.xlu1 %v1773_v21, %s1645_s26 }
 0x156   : > { %v975_v2 = vpop.permute.xlu1 %974 }
 0x158   : > { %434 = vrot.lane.b32.xlu0 %v2444_v57, %s1643_s16  ;;  %470 = vrot.lane.b32.xlu1 %v1780_v22, %s1645_s26 }
 0x15a   : > { %v977_v13 = vpop.permute.xlu1 %976 }
 0x15c   : > { %438 = vrot.lane.b32.xlu0 %v1744_v14, %s1643_s16  ;;  %479 = vrot.lane.b32.xlu1 %v1813_v25, %s1646_s24 }
 0x15e   : > { %v979_v15 = vpop.permute.xlu1 %978 }
 0x15f   : > { %v997_v7 = vsel %vm988_vm15, %v977_v13, %v979_v15 }
 0x160   : > { %449 = vrot.lane.b32.xlu0 %v1769_v20, %s1644_s23  ;;  %483 = vrot.lane.b32.xlu1 %v1818_v26, %s1646_s24  ;;  %v2213_v20 = vpop.permute.xlu0 %556 }
 0x162   : > { %v983_v28 = vpop.permute.xlu1 %982 }
 0x164   : > { %453 = vrot.lane.b32.xlu0 %v1757_v17, %s1644_s23  ;;  %477 = vrot.lane.b32.xlu1 %v2157_v42, %s1646_s24 }
 0x166   : > { %v971_v40 = vpop.permute.xlu1 %970 }
 0x168   : > { %432 = vrot.lane.b32.xlu0 %v1737_v12, %s1643_s16  ;;  %401 = vrot.lane.b32.xlu1 %v1773_v21, %s1647_s28 }
 0x16c   : > { %464 = vrot.lane.b32.xlu0 %v2444_v57, %s1645_s26  ;;  %405 = vrot.lane.b32.xlu1 %v1780_v22, %s1647_s28 }
 0x16e   : > { %v959_v30 = vpop.permute.xlu1 %958 }
 0x170   : > { %468 = vrot.lane.b32.xlu0 %v1744_v14, %s1645_s26  ;;  %419 = vrot.lane.b32.xlu1 %v1813_v25, %s1648_s29 }
 0x172   : > { %v965_v12 = vpop.permute.xlu0 %964  ;;  %v963_v17 = vpop.permute.xlu1 %962 }
 0x173   : > { %v992_v32 = vsel %vm988_vm15, %v963_v17, %v965_v12 }
 0x174   : > { %462 = vrot.lane.b32.xlu0 %v2171_v6, %s1645_s26  ;;  %423 = vrot.lane.b32.xlu1 %v1818_v26, %s1648_s29 }
 0x176   : > { %v985_v21 = vpop.permute.xlu0 %984  ;;  %v2221_v37 = vpop.permute.xlu1 %569 }
 0x177   : > { %v1000_v22 = vsel %vm988_vm15, %v983_v28, %v985_v21 }
 0x178   : > { %481 = vrot.lane.b32.xlu0 %v2445_v34, %s1646_s24  ;;  %1067 = vmatprep.subr.bf16.mxu1 %v1000_v22 }
 0x179   : > { %417 = vrot.lane.b32.xlu1 %v2157_v42, %s1648_s29 }
 0x17a   : > { %v967_v25 = vpop.permute.xlu0 %966  ;;  %v2228_v41 = vpop.permute.xlu1 %573 }
 0x17c   : > { %485 = vrot.lane.b32.xlu0 %v2446_v27, %s1646_s24 }
 0x17e   : > { %v981_v26 = vpop.permute.xlu0 %980  ;;  %v957_v46 = vpop.permute.xlu1 %956 }
 0x17f   : > { %v998_v10 = vsel %vm988_vm15, %v979_v15, %v981_v26  ;;  %v999_v19 = vsel %vm988_vm15, %v981_v26, %v983_v28  ;;  %v989_v29 = vsel %vm988_vm15, %v957_v46, %v959_v30 }
 0x180   : > { %399 = vrot.lane.b32.xlu0 %v2444_v57, %s1647_s28  ;;  %1024 = vmatprep.subr.bf16.mxu0 %v998_v10  ;;  %v564_v57 = vsel %vm562_vm0, %v2185_v47, %v2213_v20 }
 0x181   : > { %1068 = vmatpush1.bf16.msra.mxu1 %v999_v19  ;;  %1025 = vmatpush1.bf16.msra.mxu0 %v997_v7 }
 0x182   : > { %v969_v23 = vpop.permute.xlu0 %968  ;;  %v568_v24 = vpop.permute.xlu1 %567 }
 0x183   : > { %v994_v4 = vsel %vm988_vm15, %v969_v23, %v971_v40  ;;  %v993_v16 = vsel %vm988_vm15, %v967_v25, %v969_v23  ;;  %v578_v42 = vsel %vm577_vm1, %v568_v24, %v2221_v37  ;;  %v565_v25 = vsel %vm562_vm0, %v2213_v20, %v2191_v33 }
 0x184   : > { %403 = vrot.lane.b32.xlu0 %v1744_v14, %s1647_s28  ;;  %1026 = vmatprep.subr.bf16.mxu0 %v994_v4 }
 0x185   : > { %1027 = vmatpush1.bf16.msra.mxu0 %v993_v16 }
 0x186   : > { %v973_v31 = vpop.permute.xlu0 %972  ;;  %v587_v63 = vpop.permute.xlu1 %586 }
 0x187   : > { %v996_v18 = vsel %vm988_vm15, %v973_v31, %v975_v2  ;;  %v995_v39 = vsel %vm988_vm15, %v971_v40, %v973_v31 }
 0x188   : > { %397 = vrot.lane.b32.xlu0 %v2171_v6, %s1647_s28  ;;  %1069 = vmatprep.subr.bf16.mxu1 %v996_v18 }
 0x189   : > { %1070 = vmatpush1.bf16.msra.mxu1 %v995_v39 }
 0x18a   : > { %v961_v35 = vpop.permute.xlu0 %960  ;;  %1071 = vmatprep.subr.bf16.mxu1 %v992_v32  ;;  %v591_v44 = vpop.permute.xlu1 %590 }
 0x18b   : > { %v990_v14 = vsel %vm988_vm15, %v959_v30, %v961_v35  ;;  %v991_v8 = vsel %vm988_vm15, %v961_v35, %v963_v17 }
 0x18c   : > { %421 = vrot.lane.b32.xlu0 %v2445_v34, %s1648_s29  ;;  %1028 = vmatprep.subr.bf16.mxu0 %v990_v14 }
 0x18d   : > { %1029 = vmatpush1.bf16.msra.mxu0 %v989_v29  ;;  %1072 = vmatpush1.bf16.msra.mxu1 %v991_v8  ;;  %v2447_v8 = vld [vmem:[#allocation11_spill] sm:$0xff] }
 0x18e   : > { %v561_v56 = vpop.permute.xlu0 %560  ;;  %v600_v3 = vpop.permute.xlu1 %599 }
 0x18f   : > { %v566_v21 = vsel %vm562_vm0, %v2191_v33, %v561_v56  ;;  %v2448_v56 = vld [vmem:[#allocation10_spill] sm:$0xff] }
 0x190   : > { %425 = vrot.lane.b32.xlu0 %v2446_v27, %s1648_s29 }
 0x192   : > { %v572_v49 = vpop.permute.xlu0 %571  ;;  %v604_v52 = vpop.permute.xlu1 %603 }
 0x193   : > { %v579_v62 = vsel %vm577_vm1, %v2221_v37, %v572_v49 }
 0x194   : > { %v716_v34 = vsel %vm612_vm5, %v564_v57, %v579_v62 }
 0x196   : > { %v576_v53 = vpop.permute.xlu0 %575  ;;  %v598_v43 = vpop.permute.xlu1 %597 }
 0x197   : > { %v608_v27 = vsel %vm607_vm3, %v598_v43, %v600_v3  ;;  %v581_v28 = vsel %vm577_vm1, %v2228_v41, %v576_v53 }
 0x198   : > { %v722_v26 = vsel %vm612_vm5, %v566_v21, %v581_v28 }
 0x19a   : > { %v553_v48 = vpop.permute.xlu0 %552  ;;  %v2253_v58 = vpop.permute.xlu1 %496 }
 0x19b   : > { %v563_v45 = vsel %vm562_vm0, %v553_v48, %v2185_v47  ;;  %v580_v47 = vsel %vm577_vm1, %v572_v49, %v2228_v41  ;;  %v2449_v49 = vld [vmem:[#allocation12_spill] sm:$0xff]  ;;  %vm1170_vm1 = vcmask 7168  }
 0x19c   : > { %v713_v6 = vsel %vm612_vm5, %v563_v45, %v578_v42  ;;  %v719_v19 = vsel %vm612_vm5, %v565_v25, %v580_v47 }
 0x19e   : > { %v585_v59 = vpop.permute.xlu0 %584  ;;  %v501_v51 = vpop.permute.xlu1 %500 }
 0x19f   : > { %v594_v5 = vsel %vm592_vm2, %v585_v59, %v587_v63 }
 0x1a0   : > { %v726_v30 = vsel %vm625_vm6, %v716_v34, %v594_v5 }
 0x1a2   : > { %v589_v54 = vpop.permute.xlu0 %588  ;;  %v508_v55 = vpop.permute.xlu1 %507 }
 0x1a3   : > { %v596_v12 = vsel %vm592_vm2, %v589_v54, %v591_v44  ;;  %v595_v37 = vsel %vm592_vm2, %v587_v63, %v589_v54 }
 0x1a4   : > { %v730_v23 = vsel %vm625_vm6, %v722_v26, %v596_v12  ;;  %v728_v4 = vsel %vm625_vm6, %v719_v19, %v595_v37 }
 0x1a6   : > { %v583_v50 = vpop.permute.xlu0 %582  ;;  %v540_v60 = vpop.permute.xlu1 %539 }
 0x1a7   : > { %v593_v0 = vsel %vm592_vm2, %v583_v50, %v585_v59 }
 0x1a8   : > { %v724_v13 = vsel %vm625_vm6, %v713_v6, %v593_v0  ;;  %v2450_v0 = vld [vmem:[#allocation13_spill] sm:$0xff] }
 0x1a9   : > { %v732_v22 = vsel %vm634_vm9, %v724_v13, %v608_v27 }
 0x1aa   : > { %v602_v2 = vpop.permute.xlu0 %601  ;;  %v544_v15 = vpop.permute.xlu1 %543 }
 0x1ab   : > { %v609_v40 = vsel %vm607_vm3, %v600_v3, %v602_v2  ;;  %v610_v41 = vsel %vm607_vm3, %v602_v2, %v604_v52  ;;  %v518_v3 = vsel %vm517_vm11, %v508_v55, %v2448_v56  ;;  %v2451_v55 = vld [vmem:[#allocation15_spill] sm:$0xff]  ;;  %v2452_v2 = vld [vmem:[#allocation14_spill] sm:$0xff]  ;;  %vm472_vm11 = vcmask 883712  }
 0x1ac   : > { %v735_v17 = vsel %vm634_vm9, %v726_v30, %v609_v40  ;;  %v738_v33 = vsel %vm634_vm9, %v728_v4, %v610_v41 }
 0x1ad   : > { %1030 = vmatprep.subr.bf16.mxu0 %v735_v17 }
 0x1ae   : > { %v606_v46 = vpop.permute.xlu0 %605  ;;  %1031 = vmatpush1.bf16.msra.mxu0 %v732_v22  ;;  %v538_v10 = vpop.permute.xlu1 %537 }
 0x1af   : > { %v611_v7 = vsel %vm607_vm3, %v604_v52, %v606_v46  ;;  %v548_v59 = vsel %vm547_vm7, %v538_v10, %v540_v60 }
 0x1b0   : > { %v741_v24 = vsel %vm634_vm9, %v730_v23, %v611_v7 }
 0x1b1   : > { %1073 = vmatprep.subr.bf16.mxu1 %v741_v24 }
 0x1b2   : > { %v495_v20 = vpop.permute.xlu0 %494  ;;  %1074 = vmatpush1.bf16.msra.mxu1 %v738_v33  ;;  %v2293_v16 = vpop.permute.xlu1 %436 }
 0x1b3   : > { %v504_v32 = vsel %vm502_vm4, %v495_v20, %v2253_v58 }
 0x1b4   : > { %v684_v52 = vsel %vm612_vm5, %v504_v32, %v2449_v49 }
 0x1b5   : > { %v694_v42 = vsel %vm625_vm6, %v684_v52, %v2450_v0 }
 0x1b6   : > { %v499_v31 = vpop.permute.xlu0 %498  ;;  %v2295_v63 = vpop.permute.xlu1 %440 }
 0x1b7   : > { %v506_v53 = vsel %vm502_vm4, %v499_v31, %v501_v51  ;;  %v505_v48 = vsel %vm502_vm4, %v2253_v58, %v499_v31 }
 0x1b8   : > { %v690_v5 = vsel %vm612_vm5, %v506_v53, %v2451_v55  ;;  %v687_v57 = vsel %vm612_vm5, %v505_v48, %v2072_v11 }
 0x1b9   : > { %v698_v13 = vsel %vm625_vm6, %v690_v5, %v2452_v2  ;;  %v696_v40 = vsel %vm625_vm6, %v687_v57, %v2067_v9 }
 0x1ba   : > { %v493_v18 = vpop.permute.xlu0 %492  ;;  %v2297_v39 = vpop.permute.xlu1 %451 }
 0x1bb   : > { %v503_v35 = vsel %vm502_vm4, %v493_v18, %v495_v20 }
 0x1bc   : > { %v681_v43 = vsel %vm612_vm5, %v503_v35, %v518_v3 }
 0x1be   : > { %v523_v44 = vpop.permute.xlu0 %522  ;;  %v456_v14 = vpop.permute.xlu1 %455 }
 0x1bf   : > { %v533_v29 = vsel %vm532_vm8, %v523_v44, %v2447_v8  ;;  %vm457_vm8 = vcmask 949248  }
 0x1c0   : > { %v692_v45 = vsel %vm625_vm6, %v681_v43, %v533_v29 }
 0x1c1   : > { %v700_v58 = vsel %vm634_vm9, %v692_v45, %v548_v59 }
 0x1c2   : > { %v542_v54 = vpop.permute.xlu0 %541  ;;  %v448_v50 = vpop.permute.xlu1 %447 }
 0x1c3   : > { %v549_v62 = vsel %vm547_vm7, %v540_v60, %v542_v54  ;;  %v550_v6 = vsel %vm547_vm7, %v542_v54, %v544_v15 }
 0x1c4   : > { %v703_v51 = vsel %vm634_vm9, %v694_v42, %v549_v62  ;;  %v706_v11 = vsel %vm634_vm9, %v696_v40, %v550_v6 }
 0x1c5   : > { %1032 = vmatprep.subr.bf16.mxu0 %v703_v51 }
 0x1c6   : > { %v546_v34 = vpop.permute.xlu0 %545  ;;  %1033 = vmatpush1.bf16.msra.mxu0 %v700_v58  ;;  %v467_v27 = vpop.permute.xlu1 %466 }
 0x1c7   : > { %v551_v60 = vsel %vm547_vm7, %v544_v15, %v546_v34 }
 0x1c8   : > { %v709_v28 = vsel %vm634_vm9, %v698_v13, %v551_v60 }
 0x1c9   : > { %1075 = vmatprep.subr.bf16.mxu1 %v709_v28 }
 0x1ca   : > { %v435_v30 = vpop.permute.xlu0 %434  ;;  %1076 = vmatpush1.bf16.msra.mxu1 %v706_v11  ;;  %v471_v47 = vpop.permute.xlu1 %470 }
 0x1cb   : > { %v444_v4 = vsel %vm442_vm10, %v435_v30, %v2293_v16 }
 0x1ce   : > { %v439_v12 = vpop.permute.xlu0 %438  ;;  %v480_v17 = vpop.permute.xlu1 %479 }
 0x1cf   : > { %v446_v52 = vsel %vm442_vm10, %v439_v12, %v2295_v63 }
 0x1d2   : > { %v450_v21 = vpop.permute.xlu0 %449  ;;  %v484_v22 = vpop.permute.xlu1 %483 }
 0x1d3   : > { %v459_v19 = vsel %vm457_vm8, %v450_v21, %v2297_v39  ;;  %v458_v23 = vsel %vm457_vm8, %v448_v50, %v450_v21 }
 0x1d4   : > { %v652_v31 = vsel %vm612_vm5, %v444_v4, %v459_v19 }
 0x1d6   : > { %v454_v37 = vpop.permute.xlu0 %453  ;;  %v478_v25 = vpop.permute.xlu1 %477 }
 0x1d7   : > { %v488_v18 = vsel %vm487_vm12, %v478_v25, %v480_v17  ;;  %v461_v44 = vsel %vm457_vm8, %v454_v37, %v456_v14  ;;  %v460_v56 = vsel %vm457_vm8, %v2297_v39, %v454_v37  ;;  %v445_v14 = vsel %vm442_vm10, %v2293_v16, %v439_v12  ;;  %v2453_v25 = vld [vmem:[#allocation6_spill] sm:$0xff] }
 0x1d8   : > { %v658_v48 = vsel %vm612_vm5, %v446_v52, %v461_v44  ;;  %v655_v54 = vsel %vm612_vm5, %v445_v14, %v460_v56 }
 0x1da   : > { %v433_v15 = vpop.permute.xlu0 %432  ;;  %v402_v46 = vpop.permute.xlu1 %401 }
 0x1db   : > { %v443_v9 = vsel %vm442_vm10, %v433_v15, %v435_v30  ;;  %v1108_v15 = vld [vmem:[%s323_s27] sm:$0xf] }
 0x1dc   : > { %v649_v33 = vsel %vm612_vm5, %v443_v9, %v458_v23  ;;  %vm427_vm5 = vcmask 965632   ;;  %vm1109_vm14 = vcmp.gt.f32.partialorder %v1108_v15, 0.5  ;;  %v2454_v9 = vmov 0  }
 0x1de   : > { %v465_v26 = vpop.permute.xlu0 %464  ;;  %v406_v20 = vpop.permute.xlu1 %405 }
 0x1df   : > { %v474_v24 = vsel %vm472_vm11, %v465_v26, %v467_v27 }
 0x1e0   : > { %v662_v29 = vsel %vm625_vm6, %v652_v31, %v474_v24 }
 0x1e2   : > { %v469_v41 = vpop.permute.xlu0 %468  ;;  %v420_v50 = vpop.permute.xlu1 %419 }
 0x1e3   : > { %v476_v3 = vsel %vm472_vm11, %v469_v41, %v471_v47  ;;  %v475_v53 = vsel %vm472_vm11, %v467_v27, %v469_v41  ;;  %v1568_v47 = vld [vmem:[%s2413_s3] sm:$0xff]   ;;  %v1113_v41 = vsub.s32 0, %v2453_v25 }
 0x1e4   : > { %v666_v63 = vsel %vm625_vm6, %v658_v48, %v476_v3  ;;  %v664_v0 = vsel %vm625_vm6, %v655_v54, %v475_v53  ;;  %v1140_v53 = vld [vmem:[#allocation2] sm:$0xff] }
 0x1e6   : > { %v463_v10 = vpop.permute.xlu0 %462  ;;  %v424_v55 = vpop.permute.xlu1 %423 }
 0x1e7   : > { %v473_v7 = vsel %vm472_vm11, %v463_v10, %v465_v26  ;;  %v1117_v26 = vsub.s32 1, %v2453_v25  ;;  %v1110_v10 = vsel %vm1109_vm14, 1, %v2454_v9 }
 0x1e8   : > { %v660_v35 = vsel %vm625_vm6, %v649_v33, %v473_v7  ;;  %v1114_v24 = vrot.slane %v1110_v10, %v1113_v41 }
 0x1e9   : > { %v668_v43 = vsel %vm634_vm9, %v660_v35, %v488_v18  ;;  %v1118_v7 = vrot.slane %v1110_v10, %v1117_v26 }
 0x1ea   : > { %v482_v32 = vpop.permute.xlu0 %481 }
 0x1eb   : > { %v489_v8 = vsel %vm487_vm12, %v480_v17, %v482_v32  ;;  %v490_v59 = vsel %vm487_vm12, %v482_v32, %v484_v22  ;;  %v418_v58 = vpop.permute.xlu1 %417 }
 0x1ec   : > { %v671_v49 = vsel %vm634_vm9, %v662_v29, %v489_v8  ;;  %v674_v16 = vsel %vm634_vm9, %v664_v0, %v490_v59  ;;  %v428_v34 = vsel %vm427_vm5, %v418_v58, %v420_v50 }
 0x1ed   : > { %1034 = vmatprep.subr.bf16.mxu0 %v671_v49 }
 0x1ee   : > { %v486_v39 = vpop.permute.xlu0 %485  ;;  %1035 = vmatpush1.bf16.msra.mxu0 %v668_v43 }
 0x1ef   : > { %v491_v45 = vsel %vm487_vm12, %v484_v22, %v486_v39 }
 0x1f0   : > { %v677_v62 = vsel %vm634_vm9, %v666_v63, %v491_v45 }
 0x1f1   : > { %1077 = vmatprep.subr.bf16.mxu1 %v677_v62 }
 0x1f2   : > { %v400_v42 = vpop.permute.xlu0 %399  ;;  %1078 = vmatpush1.bf16.msra.mxu1 %v674_v16 }
 0x1f3   : > { %v409_v6 = vsel %vm407_vm13, %v400_v42, %v402_v46 }
 0x1f4   : > { %v629_v13 = vsel %vm625_vm6, %v2008_v1, %v409_v6 }
 0x1f6   : > { %v404_v5 = vpop.permute.xlu0 %403 }
 0x1f7   : > { %v411_v28 = vsel %vm407_vm13, %v404_v5, %v406_v20  ;;  %v410_v11 = vsel %vm407_vm13, %v402_v46, %v404_v5  ;;  %v1121_v46 = vsub.s32 2, %v2453_v25 }
 0x1f8   : > { %v633_v1 = vsel %vm625_vm6, %v2035_v38, %v411_v28  ;;  %v631_v37 = vsel %vm625_vm6, %v2143_v61, %v410_v11  ;;  %v1125_v61 = vsub.s32 3, %v2453_v25 }
 0x1f9   : > { %v1122_v33 = vrot.slane %v1110_v10, %v1121_v46 }
 0x1fa   : > { %v398_v51 = vpop.permute.xlu0 %397  ;;  %v1126_v20 = vrot.slane %v1110_v10, %v1125_v61 }
 0x1fb   : > { %v408_v57 = vsel %vm407_vm13, %v398_v51, %v400_v42  ;;  %vm1129_vm15 = vcmp.eq.s32.totalorder %v1122_v33, 1 }
 0x1fc   : > { %v627_v60 = vsel %vm625_vm6, %v2078_v36, %v408_v57  ;;  %vm1128_vm6 = vcmp.eq.s32.totalorder %v1118_v7, 1  ;;  %vm1130_vm0 = vcmp.eq.s32.totalorder %v1126_v20, 1 }
 0x1fd   : > { %v636_v30 = vsel %vm634_vm9, %v627_v60, %v428_v34  ;;  %v1162_v60 = vld [vmem:[#allocation3] sm:$0xff] }
 0x1fe   : > { %v422_v27 = vpop.permute.xlu0 %421 }
 0x1ff   : > { %v429_v2 = vsel %vm427_vm5, %v420_v50, %v422_v27  ;;  %v430_v12 = vsel %vm427_vm5, %v422_v27, %v424_v55 }
 0x200   : > { %v639_v40 = vsel %vm634_vm9, %v629_v13, %v429_v2  ;;  %v642_v22 = vsel %vm634_vm9, %v631_v37, %v430_v12 }
 0x201   : > { %1036 = vmatprep.subr.bf16.mxu0 %v639_v40  ;;  %v1172_v40 = vld [vmem:[#allocation4] sm:$0xff] }
 0x202   : > { %v426_v36 = vpop.permute.xlu0 %425  ;;  %1037 = vmatpush1.bf16.msra.mxu0 %v636_v30 }
 0x203   : > { %v431_v17 = vsel %vm427_vm5, %v424_v55, %v426_v36 }
 0x204   : > { %v645_v21 = vsel %vm634_vm9, %v633_v1, %v431_v17  ;;  %vm1127_vm9 = vcmp.eq.s32.totalorder %v1114_v24, 1 }
 0x205   : > { %1055 = vmatmul.mubr.bf16.vlgmr.msra.gmra.mxu0 %v1568_v47  ;;  %1079 = vmatprep.subr.bf16.mxu1 %v645_v21 }
 0x206   : > { %1080 = vmatpush1.bf16.msra.mxu1 %v642_v22 }
 0x209   : > { %1098 = vmatmul.mubr.bf16.vlgmr.msra.gmra.mxu1 %v1568_v47 }
 0x2c5   : > { %v1056_v38 = vpop.f32.mrf.mxu0 }
 0x2c7   : > { %v1058_v19 = vpop.f32.mrf.mxu0 }
 0x2c8   : > { %1209 = vmatprep.subr.mxu0 %v1058_v19 }
 0x2c9   : > { %v1060_v23 = vpop.f32.mrf.mxu0  ;;  %v1099_v4 = vpop.f32.mrf.mxu1  ;;  %1210 = vmatpush1.xpose.msra.mxu0 %v1056_v38 }
 0x2ca   : > { %v1131_v8 = vsel %vm1127_vm9, %v1060_v23, -1e+30 }
 0x2cb   : > { %v1062_v31 = vpop.f32.mrf.mxu0  ;;  %v1101_v18 = vpop.f32.mrf.mxu1 }
 0x2cc   : > { %1279 = vmatprep.subr.mxu1 %v1101_v18  ;;  %v1132_v35 = vsel %vm1128_vm6, %v1062_v31, -1e+30 }
 0x2cd   : > { %v1103_v32 = vpop.f32.mrf.mxu1  ;;  %1280 = vmatpush1.xpose.msra.mxu1 %v1099_v4  ;;  %v1135_v3 = vmax.f32 %v1131_v8, %v1132_v35 }
 0x2ce   : > { %v1133_v29 = vsel %vm1129_vm15, %v1103_v32, -1e+30 }
 0x2cf   : > { %v1105_v44 = vpop.f32.mrf.mxu1 }
 0x2d0   : > { %v1134_v56 = vsel %vm1130_vm0, %v1105_v44, -1e+30 }
 0x2d1   : > { %v1136_v49 = vmax.f32 %v1133_v29, %v1134_v56 }
 0x2d3   : > { %v1137_v52 = vmax.f32 %v1135_v3, %v1136_v49 }
 0x2d5   : > { %1138 = vmax.xlane.f32.xlu0 %v1137_v52 }
 0x35e   : > { %v1139_v43 = vpop.xlane.xlu0 %1138 }
 0x35f   : > { %v1141_v14 = vmax.f32 %v1140_v53, %v1139_v43 }
 0x361   : > { %v1142_v48 = vsub.f32 %v1140_v53, %v1141_v14  ;;  %1322 = vst.msk [vmem:[#allocation2] sm:$0xff] %vm1170_vm1, %v1141_v14  ;;  %1147 = vperm.xlu1 %1565, %v1141_v14  }
 0x363   : > { %v1143_v59 = vmul.f32 1.442695, %v1142_v48 }
 0x365   : > { %1569 = vpow2.f32 %v1143_v59 }
 0x372   : > { %v1570_v39 = vpop.eup %1569 }
 0x373   : > { %1175 = vperm.xlu0 %1566, %v1570_v39   ;;  %v1163_v2 = vmul.f32 %v1570_v39, %v1162_v60 }
 0x3dc   : > { %v1148_v54 = vpop.permute.xlu1 %1147 }
 0x3dd   : > { %v1150_v45 = vsub.f32 %v1131_v8, %v1148_v54  ;;  %v1151_v63 = vsub.f32 %v1132_v35, %v1148_v54  ;;  %v1152_v50 = vsub.f32 %v1133_v29, %v1148_v54  ;;  %v1153_v62 = vsub.f32 %v1134_v56, %v1148_v54 }
 0x3df   : > { %v1154_v0 = vmul.f32 1.442695, %v1150_v45  ;;  %v1156_v16 = vmul.f32 1.442695, %v1151_v63  ;;  %v1158_v42 = vmul.f32 1.442695, %v1152_v50 }
 0x3e0   : > { %v1160_v55 = vmul.f32 1.442695, %v1153_v62 }
 0x3e1   : > { %1571 = vpow2.f32 %v1154_v0 }
 0x3e2   : > { %1573 = vpow2.f32 %v1156_v16 }
 0x3e3   : > { %1575 = vpow2.f32 %v1158_v42 }
 0x3e4   : > { %1577 = vpow2.f32 %v1160_v55 }
 0x3ee   : > { %v1572_v5 = vpop.eup %1571  ;;  %v1176_v11 = vpop.permute.xlu0 %1175 }
 0x3ef   : > { %v1574_v51 = vpop.eup %1573  ;;  %v1178_v36 = vmul.f32 %v1176_v11, %v1172_v40 }
 0x3f0   : > { %v1576_v57 = vpop.eup %1575  ;;  %1243 = vmatprep.mubr.f32.mxu0 %v1574_v51  ;;  %v1164_v58 = vadd.f32 %v1574_v51, %v1572_v5 }
 0x3f1   : > { %v1578_v6 = vpop.eup %1577  ;;  %1244 = vmatmul.mubr.f32.vlgmr.msra.gmra.mxu0 %v1572_v5 }
 0x3f2   : > { %1313 = vmatprep.mubr.f32.mxu1 %v1578_v6  ;;  %v1165_v34 = vadd.f32 %v1576_v57, %v1164_v58 }
 0x3f3   : > { %1314 = vmatmul.mubr.f32.vlgmr.msra.gmra.mxu1 %v1576_v57 }
 0x3f4   : > { %v1166_v27 = vadd.f32 %v1578_v6, %v1165_v34 }
 0x3f6   : > { %1167 = vadd.xlane.f32.xlu1 %v1166_v27 }
 0x47f   : > { %v1168_v13 = vpop.xlane.xlu1 %1167 }
 0x480   : > { %v1169_v28 = vadd.f32 %v1168_v13, %v1163_v2 }
 0x482   : > { %1171 = vst.msk [vmem:[#allocation3] sm:$0xff] %vm1170_vm1, %v1169_v28 }
 0x4b1   : > { %v1245_v30 = vpop.f32.mrf.mxu0 }
 0x4b3   : > { %v1315_v47 = vpop.f32.mrf.mxu1  ;;  %v1247_v12 = vpop.f32.mrf.mxu0 }
 0x4b4   : > { %v1316_v17 = vadd.f32 %v1315_v47, %v1245_v30  ;;  %1326 = sbr.rel (%p1483_p9) target bundleno = 1476 (0x5c4), region = 44 }
 0x4b5   : > { %v1317_v1 = vpop.f32.mrf.mxu1 }
 0x4b6   : > { %v1319_v21 = vadd.f32 %v1316_v17, %v1178_v36 }
 0x4b8   : > { %1321 = vst.msk [vmem:[#allocation4] sm:$0xff] %vm607_vm3, %v1319_v21 }
 0x4b9   : > { %v1327_v37 = vld [vmem:[#allocation3] sm:$0xff]  ;;  %v1649_v22 = vmov 0  }
 0x4ba   : > { %1579 = vset.pattern.permute.xlu0 %v1649_v22  ;;  %1580 = vrcp.f32 %v1327_v37 }
 0x4bf   : > { %v1329_v25 = vld [vmem:[#allocation4] sm:$0xff] }
 0x4c7   : > { %v1581_v15 = vpop.eup %1580 }
 0x4c8   : > { %1332 = vperm.xlu0 %1579, %v1581_v15  }
 0x543   : > { %v1333_v26 = vpop.permute.xlu0 %1332 }
 0x544   : > { %v1335_v38 = vmul.f32 %v1333_v26, %v1329_v25 }
 0x546   : > { %1336 = vxpose.xlu0.b32.start.end [1/1] (short) (narrow) %v1335_v38, 8 }
 0x5c2   : > { %v1352_v41 = vpop.trf.xlu0 }
 0x5c3   : > { %1368 = vst.msk [vmem:[%s1718_s6] sm:$0xff] %vm607_vm3, %v1352_v41 }
 0x5c4 PF: > { %s14_s19 = sadd.s32 1, %s1620_s19   ;;  %s2455_s15 = smov %s1612_s17 }
 0x5c5   : > { %p11_p10 = scmp.ge.s32.totalorder %s14_s19, 6   ;;  %s2456_s16 = smov %s1616_s18 }
 0x5c6   : > { %s2457_s17 = smov %s2460_s20  ;;  %s2458_s18 = smov %s2464_s21 }
 0x5c7   :  { %13 = sbr.rel (!%p11_p10) target bundleno = 3 (0x3), region = 80 }

</bundles_post_ra>
